<compile_context>
chip_gen: v5e
topology: v5e:2x2
jax: 0.10.0
libtpu: 0.0.40
codegen_flags: <defaults>
</compile_context>

<pallas_src>
import functools
import math

import numpy as np

import jax
import jax.numpy as jnp
from jax.experimental import pallas as pl
from jax.experimental.pallas import tpu as pltpu


def _round_up(a, b):
    return (a + b - 1) // b * b


def _pad2d(a, rows, cols):
    pr, pc = rows - a.shape[0], cols - a.shape[1]
    if pr or pc:
        a = jnp.pad(a, ((0, pr), (0, pc)))
    return a


def _largest_aligned_tile(padded_dim, requested, align=128):
    """Largest multiple of `align` that divides `padded_dim` and is <= requested."""
    nb = padded_dim // align
    rb = max(1, requested // align)
    best = 1
    for d in range(1, rb + 1):
        if nb % d == 0:
            best = d
    return best * align


def hamilton_weight(r, i, j, k):
    """Builds the Hamilton block weight matrix (matches the torch.cat order)."""
    r1 = jnp.concatenate([r, -i, -j, -k], axis=0)
    i1 = jnp.concatenate([i, r, -k, j], axis=0)
    j1 = jnp.concatenate([j, k, r, -i], axis=0)
    k1 = jnp.concatenate([k, -j, i, r], axis=0)
    return jnp.concatenate([r1, i1, j1, k1], axis=1)  # (in_features, out_features)


# ---------------------------------------------------------------------------
# Kernel 1: mid = x @ W        (feature transform; row-tiled, fully parallel)
# ---------------------------------------------------------------------------
def _xw_kernel(x_ref, w_ref, mid_ref):
    mid_ref[...] = jnp.dot(
        x_ref[...], w_ref[...], preferred_element_type=jnp.float32
    ).astype(mid_ref.dtype)


# ---------------------------------------------------------------------------
# Kernel 2: out = relu(adj @ mid)   (neighborhood aggregation, K-tiled)
# ---------------------------------------------------------------------------
def _make_adj_relu_kernel(mid_resident, tile_k):
    def kernel(adj_ref, mid_ref, out_ref, acc_ref):
        kk = pl.program_id(1)

        @pl.when(kk == 0)
        def _():
            acc_ref[...] = jnp.zeros_like(acc_ref)

        if mid_resident:
            # mid is the full (n_p, f_out_p) array, DMA'd to VMEM once; take the
            # tile_k-aligned slab for this K step.
            off = pl.multiple_of(kk * tile_k, tile_k)
            mid_blk = mid_ref[pl.ds(off, tile_k), :]
        else:
            mid_blk = mid_ref[...]

        acc_ref[...] += jnp.dot(
            adj_ref[...], mid_blk, preferred_element_type=jnp.float32
        )

        @pl.when(kk == pl.num_programs(1) - 1)
        def _():
            out_ref[...] = jnp.maximum(acc_ref[...], 0.0).astype(out_ref.dtype)

    return kernel


@functools.partial(
    jax.jit,
    static_argnames=(
        "tile_m", "tile_k", "xw_tile_m", "compute_dtype", "out_dtype",
        "mid_resident_budget_bytes", "adj_buffers", "use_core_parallel",
    ),
)
def qgnn_forward(x, adj, r, i, j, k, *,
                 tile_m=512, tile_k=512, xw_tile_m=512,
                 compute_dtype=jnp.bfloat16, out_dtype=None,
                 mid_resident_budget_bytes=8 << 20,
                 adj_buffers=2, use_core_parallel=False):
    """Pallas implementation of QGNNLayer.forward (quaternion_ff=True, act=relu)."""
    w = hamilton_weight(r, i, j, k)

    n, f_in = x.shape
    f_out = w.shape[1]
    assert adj.shape == (n, n)
    assert w.shape[0] == f_in

    out_dtype = x.dtype if out_dtype is None else np.dtype(out_dtype)
    cd_bytes = np.dtype(compute_dtype).itemsize
    out_bytes = np.dtype(out_dtype).itemsize

    # Pad N to a multiple of 128 only (no lcm over-padding); effective tiles are
    # the largest 128-multiples that divide n_p and are <= the requested sizes.
    n_p = _round_up(n, 128)
    f_out_p = _round_up(f_out, 128)       # lane-dense output -> unmasked stores
    tm = _largest_aligned_tile(n_p, tile_m)
    tk = _largest_aligned_tile(n_p, tile_k)
    tm1 = _largest_aligned_tile(n_p, xw_tile_m)

    # Cast to the compute dtype BEFORE padding; under jit the cast+pad fuse so
    # adj (the dominant HBM stream) is touched once before the kernel.
    # TODO(synk): in a multi-layer / training loop, pre-cast + pre-pad adj once
    # outside this call (adj is static across iterations in the GNN).
    xc = _pad2d(x.astype(compute_dtype), n_p, f_in)
    wc = _pad2d(w.astype(compute_dtype), f_in, f_out_p)
    adjc = _pad2d(adj.astype(compute_dtype), n_p, n_p)

    # ---- kernel 1: mid = x @ W  (kept in compute_dtype for the second MXU pass)
    vmem1 = (2 * tm1 * f_in * cd_bytes
             + 2 * f_in * f_out_p * cd_bytes
             + 2 * tm1 * f_out_p * cd_bytes)
    vmem1 = min(max(int(vmem1 * 1.25) + (2 << 20), 32 << 20), 64 << 20)

    mid = pl.pallas_call(
        _xw_kernel,
        out_shape=jax.ShapeDtypeStruct((n_p, f_out_p), compute_dtype),
        grid_spec=pltpu.PrefetchScalarGridSpec(
            num_scalar_prefetch=0,
            grid=(n_p // tm1,),
            in_specs=[
                pl.BlockSpec((tm1, f_in), lambda m: (m, 0)),
                pl.BlockSpec((f_in, f_out_p), lambda m: (0, 0)),
            ],
            out_specs=pl.BlockSpec((tm1, f_out_p), lambda m: (m, 0)),
        ),
        compiler_params=pltpu.CompilerParams(
            dimension_semantics=("parallel",),
            vmem_limit_bytes=vmem1,
        ),
    )(xc, wc)

    # ---- kernel 2: out = relu(adj @ mid), K-tiled with f32 accumulator
    mid_bytes = n_p * f_out_p * cd_bytes
    mid_resident = mid_bytes <= mid_resident_budget_bytes

    if mid_resident:
        # Constant block index -> mid is DMA'd HBM->VMEM exactly once.
        mid_spec = pl.BlockSpec((n_p, f_out_p), lambda m, kk: (0, 0))
        mid_buf_bytes = 2 * mid_bytes
    else:
        mid_spec = pl.BlockSpec((tk, f_out_p), lambda m, kk: (kk, 0))
        mid_buf_bytes = 2 * tk * f_out_p * cd_bytes

    if adj_buffers != 2:
        adj_spec = pl.BlockSpec((tm, tk), lambda m, kk: (m, kk),
                                pipeline_mode=pl.Buffered(adj_buffers))
    else:
        adj_spec = pl.BlockSpec((tm, tk), lambda m, kk: (m, kk))

    vmem2 = (adj_buffers * tm * tk * cd_bytes
             + mid_buf_bytes
             + 2 * tm * f_out_p * out_bytes
             + tm * f_out_p * 4)
    vmem2 = min(max(int(vmem2 * 1.25) + (2 << 20), 32 << 20), 64 << 20)

    if use_core_parallel:
        # v7x only: shard the independent M axis across the 2 TensorCores.
        # The K reduction axis stays last and ARBITRARY so the per-core
        # accumulator carry (init at kk==0, store at kk==last) remains valid.
        dim_sem = (pltpu.CORE_PARALLEL, pltpu.ARBITRARY)
    else:
        dim_sem = ("parallel", "arbitrary")

    out_p = pl.pallas_call(
        _make_adj_relu_kernel(mid_resident, tk),
        out_shape=jax.ShapeDtypeStruct((n_p, f_out_p), out_dtype),
        grid_spec=pltpu.PrefetchScalarGridSpec(
            num_scalar_prefetch=0,
            grid=(n_p // tm, n_p // tk),
            in_specs=[adj_spec, mid_spec],
            out_specs=pl.BlockSpec((tm, f_out_p), lambda m, kk: (m, 0)),
            scratch_shapes=[pltpu.VMEM((tm, f_out_p), jnp.float32)],
        ),
        compiler_params=pltpu.CompilerParams(
            dimension_semantics=dim_sem,
            vmem_limit_bytes=vmem2,
        ),
    )(adjc, mid)

    return out_p[:n, :f_out]


def init_quaternion_params(key, in_features, out_features):
    """Deterministic synthetic init for the quaternion weights.

    QGNNLayer stores r/i/j/k of shape (in_features//4, out_features//4).
    # TODO(synk): replicate the exact quaternion_init (polar-form) scheme; a
    # glorot-scaled uniform is used here since the weights are synthetic inputs.
    """
    fi, fo = in_features // 4, out_features // 4
    stdv = math.sqrt(6.0 / (fi + fo))
    ks = jax.random.split(key, 4)
    mk = lambda kk: jax.random.uniform(
        kk, (fi, fo), jnp.float32, minval=-stdv, maxval=stdv
    )
    return mk(ks[0]), mk(ks[1]), mk(ks[2]), mk(ks[3])


if __name__ == "__main__":
    key = jax.random.PRNGKey(0)
    k_x, k_adj, k_w = jax.random.split(key, 3)

    N = 256            # number of graph nodes
    IN_FEATURES = 128  # must be divisible by 4
    OUT_FEATURES = 128

    x = jax.random.normal(k_x, (N, IN_FEATURES), jnp.float32)
    # symmetric dense adjacency
    a = jax.random.uniform(k_adj, (N, N), jnp.float32)
    adj = (a + a.T) * 0.5

    r, i, j, k = init_quaternion_params(k_w, IN_FEATURES, OUT_FEATURES)

    out = qgnn_forward(x, adj, r, i, j, k)
    out = jax.block_until_ready(out)

    # reference: same bf16-on-MXU / f32-accumulate path as the kernels
    cd = jnp.bfloat16
    w_ref = hamilton_weight(r, i, j, k)
    mid_ref = jnp.dot(
        x.astype(cd), w_ref.astype(cd), preferred_element_type=jnp.float32
    ).astype(cd)
    ref = jnp.maximum(
        jnp.dot(adj.astype(cd), mid_ref, preferred_element_type=jnp.float32), 0.0
    )

    assert out.shape == (N, OUT_FEATURES)
    assert out.dtype == x.dtype
    err = float(jnp.max(jnp.abs(out - ref)))
    assert jnp.allclose(out, ref, rtol=1e-2, atol=1e-2), err

    print("KERNEL_OK")
</pallas_src>

<mosaic_0001>
module attributes {stable_mosaic.version = 11 : i64} {
  func.func @_xw_kernel(%arg0: i32, %arg1: memref<256x128xbf16, #tpu.memory_space<vmem>>, %arg2: memref<128x128xbf16, #tpu.memory_space<vmem>>, %arg3: memref<256x128xbf16, #tpu.memory_space<vmem>>) attributes {dimension_semantics = [#tpu.dimension_semantics<parallel>], iteration_bounds = array<i64: 1>, scalar_prefetch = 0 : i64, scratch_operands = 0 : i64, tpu.core_type = #tpu.core_type<tc>, window_params = [{transform_indices = @transform_0, window_bounds = array<i64: 256, 128>}, {pipeline_mode = #tpu.pipeline_mode<synchronous>, transform_indices = @transform_1, window_bounds = array<i64: 128, 128>}, {transform_indices = @transform_2, window_bounds = array<i64: 256, 128>}]} {
    %c0 = arith.constant 0 : index
    %c0_0 = arith.constant 0 : index
    %0 = vector.load %arg1[%c0, %c0_0] : memref<256x128xbf16, #tpu.memory_space<vmem>>, vector<256x128xbf16>
    %c0_1 = arith.constant 0 : index
    %c0_2 = arith.constant 0 : index
    %1 = vector.load %arg2[%c0_1, %c0_2] : memref<128x128xbf16, #tpu.memory_space<vmem>>, vector<128x128xbf16>
    %cst = arith.constant dense<0.000000e+00> : vector<256x128xf32>
    %2 = tpu.matmul %0, %1, %cst {dimension_numbers = #tpu.dot_dimension_numbers<[1], [0], [0], [1], [0, 0, 1, 1], [], []>} : vector<256x128xbf16>, vector<128x128xbf16>, vector<256x128xf32> -> vector<256x128xf32>
    %3 = arith.truncf %2 : vector<256x128xf32> to vector<256x128xbf16>
    %c0_3 = arith.constant 0 : index
    %c0_4 = arith.constant 0 : index
    %4 = vector.load %arg3[%c0_3, %c0_4] : memref<256x128xbf16, #tpu.memory_space<vmem>>, vector<256x128xbf16>
    tpu.vector_store %arg3[%c0_3, %c0_4], %3 {strides = array<i32>} : memref<256x128xbf16, #tpu.memory_space<vmem>>, vector<256x128xbf16>,
    return
  }
  func.func @transform_0(%arg0: i32) -> (i32, i32) {
    %c0_i32 = arith.constant 0 : i32
    %c0_i32_0 = arith.constant 0 : i32
    return %arg0, %c0_i32 : i32, i32
  }
  func.func @transform_1(%arg0: i32) -> (i32, i32) {
    %c0_i32 = arith.constant 0 : i32
    %c0_i32_0 = arith.constant 0 : i32
    %c0_i32_1 = arith.constant 0 : i32
    return %c0_i32, %c0_i32_0 : i32, i32
  }
  func.func @transform_2(%arg0: i32) -> (i32, i32) {
    %c0_i32 = arith.constant 0 : i32
    %c0_i32_0 = arith.constant 0 : i32
    return %arg0, %c0_i32 : i32, i32
  }
}

module attributes {stable_mosaic.version = 11 : i64} {
  func.func @kernel(%arg0: i32, %arg1: i32, %arg2: memref<256x256xbf16, #tpu.memory_space<vmem>>, %arg3: memref<256x128xbf16, #tpu.memory_space<vmem>>, %arg4: memref<256x128xf32, #tpu.memory_space<vmem>>, %arg5: memref<256x128xf32, #tpu.memory_space<vmem>>) attributes {dimension_semantics = [#tpu.dimension_semantics<parallel>, #tpu.dimension_semantics<arbitrary>], iteration_bounds = array<i64: 1, 1>, scalar_prefetch = 0 : i64, scratch_operands = 1 : i64, tpu.core_type = #tpu.core_type<tc>, window_params = [{transform_indices = @transform_0, window_bounds = array<i64: 256, 256>}, {pipeline_mode = #tpu.pipeline_mode<synchronous>, transform_indices = @transform_1, window_bounds = array<i64: 256, 128>}, {transform_indices = @transform_2, window_bounds = array<i64: 256, 128>}]} {
    %c0_i32 = arith.constant 0 : i32
    %0 = arith.cmpi eq, %arg1, %c0_i32 : i32
    %1 = arith.extui %0 : i1 to i32
    %c0_i32_0 = arith.constant 0 : i32
    %2 = arith.cmpi ne, %1, %c0_i32_0 : i32
    scf.if %2 {
      %cst_9 = arith.constant 0.000000e+00 : f32
      %15 = vector.broadcast %cst_9 : f32 to vector<256x128xf32>
      %c0_10 = arith.constant 0 : index
      %c0_11 = arith.constant 0 : index
      %16 = vector.load %arg5[%c0_10, %c0_11] : memref<256x128xf32, #tpu.memory_space<vmem>>, vector<256x128xf32>
      tpu.vector_store %arg5[%c0_10, %c0_11], %15 {strides = array<i32>} : memref<256x128xf32, #tpu.memory_space<vmem>>, vector<256x128xf32>,
    } else {
    }
    %c256_i32 = arith.constant 256 : i32
    %3 = arith.muli %arg1, %c256_i32 : i32
    %4 = tpu.assume_multiple %3, 256 : i32
    %5 = arith.index_cast %4 : i32 to index
    %c0 = arith.constant 0 : index
    %6 = vector.load %arg3[%5, %c0] : memref<256x128xbf16, #tpu.memory_space<vmem>>, vector<256x128xbf16>
    %c0_1 = arith.constant 0 : index
    %c0_2 = arith.constant 0 : index
    %7 = vector.load %arg5[%c0_1, %c0_2] : memref<256x128xf32, #tpu.memory_space<vmem>>, vector<256x128xf32>
    %c0_3 = arith.constant 0 : index
    %c0_4 = arith.constant 0 : index
    %8 = vector.load %arg2[%c0_3, %c0_4] : memref<256x256xbf16, #tpu.memory_space<vmem>>, vector<256x256xbf16>
    %cst = arith.constant dense<0.000000e+00> : vector<256x128xf32>
    %9 = tpu.matmul %8, %6, %cst {dimension_numbers = #tpu.dot_dimension_numbers<[1], [0], [0], [1], [0, 0, 1, 1], [], []>} : vector<256x256xbf16>, vector<256x128xbf16>, vector<256x128xf32> -> vector<256x128xf32>
    %10 = arith.addf %7, %9 : vector<256x128xf32>
    %c0_5 = arith.constant 0 : index
    %c0_6 = arith.constant 0 : index
    %11 = vector.load %arg5[%c0_5, %c0_6] : memref<256x128xf32, #tpu.memory_space<vmem>>, vector<256x128xf32>
    tpu.vector_store %arg5[%c0_5, %c0_6], %10 {strides = array<i32>} : memref<256x128xf32, #tpu.memory_space<vmem>>, vector<256x128xf32>,
    %c0_i32_7 = arith.constant 0 : i32
    %12 = arith.cmpi eq, %arg1, %c0_i32_7 : i32
    %13 = arith.extui %12 : i1 to i32
    %c0_i32_8 = arith.constant 0 : i32
    %14 = arith.cmpi ne, %13, %c0_i32_8 : i32
    scf.if %14 {
      %c0_9 = arith.constant 0 : index
      %c0_10 = arith.constant 0 : index
      %15 = vector.load %arg5[%c0_9, %c0_10] : memref<256x128xf32, #tpu.memory_space<vmem>>, vector<256x128xf32>
      %cst_11 = arith.constant 0.000000e+00 : f32
      %16 = vector.broadcast %cst_11 : f32 to vector<256x128xf32>
      %17 = arith.maximumf %15, %16 : vector<256x128xf32>
      %c0_12 = arith.constant 0 : index
      %c0_13 = arith.constant 0 : index
      %18 = vector.load %arg4[%c0_12, %c0_13] : memref<256x128xf32, #tpu.memory_space<vmem>>, vector<256x128xf32>
      tpu.vector_store %arg4[%c0_12, %c0_13], %17 {strides = array<i32>} : memref<256x128xf32, #tpu.memory_space<vmem>>, vector<256x128xf32>,
    } else {
    }
    return
  }
  func.func @transform_0(%arg0: i32, %arg1: i32) -> (i32, i32) {
    %c0_i32 = arith.constant 0 : i32
    return %arg0, %arg1 : i32, i32
  }
  func.func @transform_1(%arg0: i32, %arg1: i32) -> (i32, i32) {
    %c0_i32 = arith.constant 0 : i32
    %c0_i32_0 = arith.constant 0 : i32
    %c0_i32_1 = arith.constant 0 : i32
    return %c0_i32, %c0_i32_0 : i32, i32
  }
  func.func @transform_2(%arg0: i32, %arg1: i32) -> (i32, i32) {
    %c0_i32 = arith.constant 0 : i32
    %c0_i32_0 = arith.constant 0 : i32
    return %arg0, %c0_i32 : i32, i32
  }
}

</mosaic_0001>

<bundles_post_ra>
// kernel: qgnn_forward.2
= control target key start
LH: loop header
LB: loop body
LE: loop exit
PB: predicated region body
PF: predicated region fallthrough
CT: control target
= control target key end

     0   :  { %s734_s1 = inlined_call_operand.vmem [shape: bf16[128,128], index: 1, kind: input, shape index: {}]   ;;  %s735_s0 = inlined_call_operand.vmem [shape: bf16[256,128], index: 0, kind: input, shape index: {}]   ;;  %s736_s2 = inlined_call_operand.vmem [shape: bf16[256,128], index: 2, kind: output, shape index: {}]  }
   0x1   :  { %v479_v0 = vld [vmem:[%s734_s1 + $0x38] sm:$0xff]  ;;  %v478_v1 = vld [vmem:[%s734_s1 + $0x30] sm:$0xff]  ;;  %v477_v2 = vld [vmem:[%s734_s1 + $0x28] sm:$0xff] }
   0x2   :  { %203 = vmatpush.bf16.msra.mxu0 %v479_v0  ;;  %575 = vmatpush.bf16.msra.mxu1 %v479_v0  ;;  %v476_v3 = vld [vmem:[%s734_s1 + $0x20] sm:$0xff]  ;;  %v475_v4 = vld [vmem:[%s734_s1 + $0x18] sm:$0xff]  ;;  %v474_v5 = vld [vmem:[%s734_s1 + $0x10] sm:$0xff] }
   0x3   :  { %576 = vmatpush.bf16.msra.mxu2 %v479_v0  ;;  %577 = vmatpush.bf16.msra.mxu3 %v479_v0  ;;  %v473_v6 = vld [vmem:[%s734_s1 + $0x8] sm:$0xff]  ;;  %v472_v7 = vld [vmem:[%s734_s1] sm:$0xff]  ;;  %v458_v16 = vld [vmem:[%s735_s0 + $0x10] sm:$0xff] }
   0x4   :  { %v456_v8 = vld [vmem:[%s735_s0] sm:$0xff]  ;;  %v457_v12 = vld [vmem:[%s735_s0 + $0x8] sm:$0xff]  ;;  %v462_v17 = vld [vmem:[%s735_s0 + $0x30] sm:$0xff] }
   0x5   :  { %v460_v9 = vld [vmem:[%s735_s0 + $0x20] sm:$0xff]  ;;  %v461_v13 = vld [vmem:[%s735_s0 + $0x28] sm:$0xff]  ;;  %v466_v18 = vld [vmem:[%s735_s0 + $0x50] sm:$0xff] }
   0x6   :  { %204 = vmatpush.bf16.msra.mxu0 %v478_v1  ;;  %578 = vmatpush.bf16.msra.mxu1 %v478_v1  ;;  %v464_v10 = vld [vmem:[%s735_s0 + $0x40] sm:$0xff]  ;;  %v465_v14 = vld [vmem:[%s735_s0 + $0x48] sm:$0xff]  ;;  %v470_v19 = vld [vmem:[%s735_s0 + $0x70] sm:$0xff] }
   0x7   :  { %579 = vmatpush.bf16.msra.mxu2 %v478_v1  ;;  %580 = vmatpush.bf16.msra.mxu3 %v478_v1  ;;  %v468_v11 = vld [vmem:[%s735_s0 + $0x60] sm:$0xff]  ;;  %v469_v15 = vld [vmem:[%s735_s0 + $0x68] sm:$0xff]  ;;  %v459_v20 = vld [vmem:[%s735_s0 + $0x18] sm:$0xff] }
   0x8   :  { %v463_v21 = vld [vmem:[%s735_s0 + $0x38] sm:$0xff] }
   0x9   :  { %v467_v22 = vld [vmem:[%s735_s0 + $0x58] sm:$0xff] }
   0xa   :  { %205 = vmatpush.bf16.msra.mxu0 %v477_v2  ;;  %581 = vmatpush.bf16.msra.mxu1 %v477_v2  ;;  %v471_v23 = vld [vmem:[%s735_s0 + $0x78] sm:$0xff] }
   0xb   :  { %582 = vmatpush.bf16.msra.mxu2 %v477_v2  ;;  %583 = vmatpush.bf16.msra.mxu3 %v477_v2 }
   0xe   :  { %206 = vmatpush.bf16.msra.mxu0 %v476_v3  ;;  %584 = vmatpush.bf16.msra.mxu1 %v476_v3 }
   0xf   :  { %585 = vmatpush.bf16.msra.mxu2 %v476_v3  ;;  %586 = vmatpush.bf16.msra.mxu3 %v476_v3 }
  0x12   :  { %207 = vmatpush.bf16.msra.mxu0 %v475_v4  ;;  %587 = vmatpush.bf16.msra.mxu1 %v475_v4 }
  0x13   :  { %588 = vmatpush.bf16.msra.mxu2 %v475_v4  ;;  %589 = vmatpush.bf16.msra.mxu3 %v475_v4 }
  0x16   :  { %208 = vmatpush.bf16.msra.mxu0 %v474_v5  ;;  %590 = vmatpush.bf16.msra.mxu1 %v474_v5 }
  0x17   :  { %591 = vmatpush.bf16.msra.mxu2 %v474_v5  ;;  %592 = vmatpush.bf16.msra.mxu3 %v474_v5 }
  0x1a   :  { %209 = vmatpush.bf16.msra.mxu0 %v473_v6  ;;  %593 = vmatpush.bf16.msra.mxu1 %v473_v6 }
  0x1b   :  { %594 = vmatpush.bf16.msra.mxu2 %v473_v6  ;;  %595 = vmatpush.bf16.msra.mxu3 %v473_v6 }
  0x1e   :  { %210 = vmatpush.bf16.msra.mxu0 %v472_v7  ;;  %596 = vmatpush.bf16.msra.mxu1 %v472_v7 }
  0x1f   :  { %597 = vmatpush.bf16.msra.mxu2 %v472_v7  ;;  %598 = vmatpush.bf16.msra.mxu3 %v472_v7 }
  0x21   :  { %211 = vmatmul.bf16.vlgmr.msra.gmra.mxu0 %v456_v8  ;;  %231 = vmatmul.bf16.vlgmr.msra.gmra.mxu1 %v460_v9 }
  0x22   :  { %251 = vmatmul.bf16.vlgmr.msra.gmra.mxu2 %v464_v10  ;;  %271 = vmatmul.bf16.vlgmr.msra.gmra.mxu3 %v468_v11 }
  0x31   :  { %216 = vmatmul.bf16.gmra.mxu0 %v457_v12  ;;  %236 = vmatmul.bf16.gmra.mxu1 %v461_v13 }
  0x32   :  { %256 = vmatmul.bf16.gmra.mxu2 %v465_v14  ;;  %276 = vmatmul.bf16.gmra.mxu3 %v469_v15 }
  0x41   :  { %221 = vmatmul.bf16.gmra.mxu0 %v458_v16  ;;  %241 = vmatmul.bf16.gmra.mxu1 %v462_v17 }
  0x42   :  { %261 = vmatmul.bf16.gmra.mxu2 %v466_v18  ;;  %281 = vmatmul.bf16.gmra.mxu3 %v470_v19 }
  0x51   :  { %226 = vmatmul.bf16.gmra.mxu0 %v459_v20  ;;  %246 = vmatmul.bf16.gmra.mxu1 %v463_v21 }
  0x52   :  { %266 = vmatmul.bf16.gmra.mxu2 %v467_v22  ;;  %286 = vmatmul.bf16.gmra.mxu3 %v471_v23 }
  0x9e   :  { %v212_v24 = vpop.f32.mrf.mxu0  ;;  %v232_v25 = vpop.f32.mrf.mxu1 }
  0xa5   :  { %v252_v26 = vpop.f32.mrf.mxu2  ;;  %v272_v27 = vpop.f32.mrf.mxu3 }
  0xa6   :  { %v214_v28 = vpop.f32.mrf.mxu0  ;;  %v234_v29 = vpop.f32.mrf.mxu1 }
  0xa7   :  { %v483_v30 = vpack.c.bf16 %v214_v28, %v212_v24  ;;  %v503_v31 = vpack.c.bf16 %v234_v29, %v232_v25 }
  0xa9   :  { %484 = vst [vmem:[%s736_s2] sm:$0xff] %v483_v30  }
  0xaa   :  { %563 = vst [vmem:[%s736_s2 + $0x20] sm:$0xff] %v503_v31  }
  0xad   :  { %v254_v32 = vpop.f32.mrf.mxu2  ;;  %v274_v33 = vpop.f32.mrf.mxu3 }
  0xae   :  { %v523_v34 = vpack.c.bf16 %v254_v32, %v252_v26  ;;  %v543_v35 = vpack.c.bf16 %v274_v33, %v272_v27  ;;  %v217_v36 = vpop.f32.mrf.mxu0  ;;  %v237_v37 = vpop.f32.mrf.mxu1 }
  0xb0   :  { %567 = vst [vmem:[%s736_s2 + $0x40] sm:$0xff] %v523_v34  }
  0xb1   :  { %571 = vst [vmem:[%s736_s2 + $0x60] sm:$0xff] %v543_v35  }
  0xb5   :  { %v257_v38 = vpop.f32.mrf.mxu2  ;;  %v277_v39 = vpop.f32.mrf.mxu3 }
  0xb6   :  { %v219_v40 = vpop.f32.mrf.mxu0  ;;  %v239_v41 = vpop.f32.mrf.mxu1 }
  0xb7   :  { %v488_v42 = vpack.c.bf16 %v219_v40, %v217_v36  ;;  %v508_v43 = vpack.c.bf16 %v239_v41, %v237_v37 }
  0xb9   :  { %560 = vst [vmem:[%s736_s2 + $0x8] sm:$0xff] %v488_v42  }
  0xba   :  { %564 = vst [vmem:[%s736_s2 + $0x28] sm:$0xff] %v508_v43  }
  0xbd   :  { %v259_v44 = vpop.f32.mrf.mxu2  ;;  %v279_v45 = vpop.f32.mrf.mxu3 }
  0xbe   :  { %v528_v46 = vpack.c.bf16 %v259_v44, %v257_v38  ;;  %v548_v47 = vpack.c.bf16 %v279_v45, %v277_v39  ;;  %v222_v48 = vpop.f32.mrf.mxu0  ;;  %v242_v49 = vpop.f32.mrf.mxu1 }
  0xc0   :  { %568 = vst [vmem:[%s736_s2 + $0x48] sm:$0xff] %v528_v46  }
  0xc1   :  { %572 = vst [vmem:[%s736_s2 + $0x68] sm:$0xff] %v548_v47  }
  0xc5   :  { %v262_v50 = vpop.f32.mrf.mxu2  ;;  %v282_v51 = vpop.f32.mrf.mxu3 }
  0xc6   :  { %v224_v52 = vpop.f32.mrf.mxu0  ;;  %v244_v53 = vpop.f32.mrf.mxu1 }
  0xc7   :  { %v493_v54 = vpack.c.bf16 %v224_v52, %v222_v48  ;;  %v513_v55 = vpack.c.bf16 %v244_v53, %v242_v49 }
  0xc9   :  { %561 = vst [vmem:[%s736_s2 + $0x10] sm:$0xff] %v493_v54  }
  0xca   :  { %565 = vst [vmem:[%s736_s2 + $0x30] sm:$0xff] %v513_v55  }
  0xcd   :  { %v264_v56 = vpop.f32.mrf.mxu2  ;;  %v284_v57 = vpop.f32.mrf.mxu3 }
  0xce   :  { %v533_v58 = vpack.c.bf16 %v264_v56, %v262_v50  ;;  %v553_v59 = vpack.c.bf16 %v284_v57, %v282_v51  ;;  %v227_v60 = vpop.f32.mrf.mxu0  ;;  %v247_v61 = vpop.f32.mrf.mxu1 }
  0xd0   :  { %569 = vst [vmem:[%s736_s2 + $0x50] sm:$0xff] %v533_v58  }
  0xd1   :  { %573 = vst [vmem:[%s736_s2 + $0x70] sm:$0xff] %v553_v59  }
  0xd5   :  { %v267_v62 = vpop.f32.mrf.mxu2  ;;  %v287_v63 = vpop.f32.mrf.mxu3 }
  0xd6   :  { %v229_v0 = vpop.f32.mrf.mxu0  ;;  %v249_v1 = vpop.f32.mrf.mxu1 }
  0xd7   :  { %v498_v2 = vpack.c.bf16 %v229_v0, %v227_v60  ;;  %v518_v3 = vpack.c.bf16 %v249_v1, %v247_v61 }
  0xd9   :  { %562 = vst [vmem:[%s736_s2 + $0x18] sm:$0xff] %v498_v2  }
  0xda   :  { %566 = vst [vmem:[%s736_s2 + $0x38] sm:$0xff] %v518_v3  }
  0xdd   :  { %v269_v4 = vpop.f32.mrf.mxu2  ;;  %v289_v5 = vpop.f32.mrf.mxu3 }
  0xde   :  { %v538_v6 = vpack.c.bf16 %v269_v4, %v267_v62  ;;  %v558_v7 = vpack.c.bf16 %v289_v5, %v287_v63 }
  0xe0   :  { %570 = vst [vmem:[%s736_s2 + $0x58] sm:$0xff] %v538_v6  }
  0xe1   :  { %574 = vst [vmem:[%s736_s2 + $0x78] sm:$0xff] %v558_v7  }

// kernel: qgnn_forward.3
= control target key start
LH: loop header
LB: loop body
LE: loop exit
PB: predicated region body
PF: predicated region fallthrough
CT: control target
= control target key end

     0   :  { %s1312_s0 = inlined_call_operand.vmem [shape: bf16[256,256], index: 0, kind: input, shape index: {}]   ;;  %s1313_s1 = inlined_call_operand.vmem [shape: bf16[256,128], index: 1, kind: input, shape index: {}]   ;;  %s1314_s2 = inlined_call_operand.hbm [shape: f32[256,128], index: 2, kind: output, shape index: {}]  }
   0x1   :  { %v965_v0 = vld [vmem:[%s1313_s1 + $0x38] sm:$0xff]  ;;  %v964_v2 = vld [vmem:[%s1313_s1 + $0x30] sm:$0xff]  ;;  %v963_v4 = vld [vmem:[%s1313_s1 + $0x28] sm:$0xff] }
   0x2   :  { %v973_v1 = vld [vmem:[%s1313_s1 + $0x78] sm:$0xff]  ;;  %405 = vmatpush.bf16.msra.mxu0 %v965_v0  ;;  %1006 = vmatpush.bf16.msra.mxu2 %v965_v0  ;;  %v972_v3 = vld [vmem:[%s1313_s1 + $0x70] sm:$0xff]  ;;  %v971_v5 = vld [vmem:[%s1313_s1 + $0x68] sm:$0xff] }
   0x3   :  { %494 = vmatpush.bf16.msra.mxu1 %v973_v1  ;;  %1014 = vmatpush.bf16.msra.mxu3 %v973_v1 }
   0x6   :  { %406 = vmatpush.bf16.msra.mxu0 %v964_v2  ;;  %1007 = vmatpush.bf16.msra.mxu2 %v964_v2 }
   0x7   :  { %495 = vmatpush.bf16.msra.mxu1 %v972_v3  ;;  %1015 = vmatpush.bf16.msra.mxu3 %v972_v3 }
   0x8   :  { %7 = vsyncpa [#allocation4], 0  ;;  %v962_v6 = vld [vmem:[%s1313_s1 + $0x20] sm:$0xff]  ;;  %v961_v8 = vld [vmem:[%s1313_s1 + $0x18] sm:$0xff]  ;;  %s752_s27 = sshll.u32 %s1314_s2, 4  ;;  %s1052_s28 = smov 128   ;;  %s753_s27 = int_to_ptr.hbm [resolvable:$true] %s752_s27 }
   0x9   :  { %v970_v7 = vld [vmem:[%s1313_s1 + $0x60] sm:$0xff]  ;;  %v969_v9 = vld [vmem:[%s1313_s1 + $0x58] sm:$0xff]  ;;  %v960_v10 = vld [vmem:[%s1313_s1 + $0x10] sm:$0xff]  ;;  %s1053_s29 = smov 8  }
   0xa   :  { %407 = vmatpush.bf16.msra.mxu0 %v963_v4  ;;  %1008 = vmatpush.bf16.msra.mxu2 %v963_v4  ;;  %v968_v11 = vld [vmem:[%s1313_s1 + $0x50] sm:$0xff]  ;;  %v959_v12 = vld [vmem:[%s1313_s1 + $0x8] sm:$0xff]  ;;  %v958_v14 = vld [vmem:[%s1313_s1] sm:$0xff] }
   0xb   :  { %496 = vmatpush.bf16.msra.mxu1 %v971_v5  ;;  %1016 = vmatpush.bf16.msra.mxu3 %v971_v5  ;;  %v967_v13 = vld [vmem:[%s1313_s1 + $0x48] sm:$0xff]  ;;  %v966_v15 = vld [vmem:[%s1313_s1 + $0x40] sm:$0xff]  ;;  %v776_v28 = vld [vmem:[%s1312_s0 + $0x10] sm:$0xf] }
   0xc   :  { %v768_v16 = vld [vmem:[%s1312_s0] sm:$0xf]  ;;  %v975_v17 = vld [vmem:[%s1312_s0 + $0x4] sm:$0xf0]  ;;  %v974_v20 = vld [vmem:[%s1312_s0 + $0x4] sm:$0xf] }
   0xd   :  { %v832_v18 = vld [vmem:[%s1312_s0 + $0x80] sm:$0xf]  ;;  %v991_v19 = vld [vmem:[%s1312_s0 + $0x84] sm:$0xf0]  ;;  %v770_v21 = vld [vmem:[%s1312_s0 + $0x8] sm:$0xf0]  ;;  %v769_v24 = vor.u32 %v975_v17, %v768_v16 }
   0xe   :  { %408 = vmatpush.bf16.msra.mxu0 %v962_v6  ;;  %1009 = vmatpush.bf16.msra.mxu2 %v962_v6  ;;  %v990_v22 = vld [vmem:[%s1312_s0 + $0x84] sm:$0xf]  ;;  %v834_v23 = vld [vmem:[%s1312_s0 + $0x88] sm:$0xf0]  ;;  %v833_v25 = vor.u32 %v991_v19, %v832_v18  ;;  %v773_v26 = vor.u32 %v974_v20, %v770_v21  ;;  %v977_v29 = vld [vmem:[%s1312_s0 + $0x14] sm:$0xf0] }
   0xf   :  { %497 = vmatpush.bf16.msra.mxu1 %v970_v7  ;;  %1017 = vmatpush.bf16.msra.mxu3 %v970_v7  ;;  %v837_v27 = vor.u32 %v990_v22, %v834_v23  ;;  %v840_v30 = vld [vmem:[%s1312_s0 + $0x90] sm:$0xf]  ;;  %v993_v31 = vld [vmem:[%s1312_s0 + $0x94] sm:$0xf0]  ;;  %v976_v32 = vld [vmem:[%s1312_s0 + $0x14] sm:$0xf]  ;;  %v777_v36 = vor.u32 %v977_v29, %v776_v28 }
  0x10   :  { %v778_v33 = vld [vmem:[%s1312_s0 + $0x18] sm:$0xf0]  ;;  %v992_v34 = vld [vmem:[%s1312_s0 + $0x94] sm:$0xf]  ;;  %v841_v37 = vor.u32 %v993_v31, %v840_v30  ;;  %v784_v40 = vld [vmem:[%s1312_s0 + $0x20] sm:$0xf] }
  0x11   :  { %v842_v35 = vld [vmem:[%s1312_s0 + $0x98] sm:$0xf0]  ;;  %v781_v38 = vor.u32 %v976_v32, %v778_v33  ;;  %v979_v41 = vld [vmem:[%s1312_s0 + $0x24] sm:$0xf0]  ;;  %v848_v42 = vld [vmem:[%s1312_s0 + $0xa0] sm:$0xf] }
  0x12   :  { %409 = vmatpush.bf16.msra.mxu0 %v961_v8  ;;  %1010 = vmatpush.bf16.msra.mxu2 %v961_v8  ;;  %v845_v39 = vor.u32 %v992_v34, %v842_v35  ;;  %v995_v43 = vld [vmem:[%s1312_s0 + $0xa4] sm:$0xf0]  ;;  %v978_v44 = vld [vmem:[%s1312_s0 + $0x24] sm:$0xf]  ;;  %v786_v45 = vld [vmem:[%s1312_s0 + $0x28] sm:$0xf0]  ;;  %v785_v48 = vor.u32 %v979_v41, %v784_v40 }
  0x13   :  { %498 = vmatpush.bf16.msra.mxu1 %v969_v9  ;;  %1018 = vmatpush.bf16.msra.mxu3 %v969_v9  ;;  %v994_v46 = vld [vmem:[%s1312_s0 + $0xa4] sm:$0xf]  ;;  %v850_v47 = vld [vmem:[%s1312_s0 + $0xa8] sm:$0xf0]  ;;  %v849_v49 = vor.u32 %v995_v43, %v848_v42  ;;  %v789_v50 = vor.u32 %v978_v44, %v786_v45  ;;  %v792_v52 = vld [vmem:[%s1312_s0 + $0x30] sm:$0xf] }
  0x14   :  { %v853_v51 = vor.u32 %v994_v46, %v850_v47  ;;  %v981_v53 = vld [vmem:[%s1312_s0 + $0x34] sm:$0xf0]  ;;  %v856_v54 = vld [vmem:[%s1312_s0 + $0xb0] sm:$0xf]  ;;  %v980_v56 = vld [vmem:[%s1312_s0 + $0x34] sm:$0xf] }
  0x15   :  { %v997_v55 = vld [vmem:[%s1312_s0 + $0xb4] sm:$0xf0]  ;;  %v794_v57 = vld [vmem:[%s1312_s0 + $0x38] sm:$0xf0]  ;;  %v996_v58 = vld [vmem:[%s1312_s0 + $0xb4] sm:$0xf]  ;;  %v793_v60 = vor.u32 %v981_v53, %v792_v52 }
  0x16   :  { %410 = vmatpush.bf16.msra.mxu0 %v960_v10  ;;  %1011 = vmatpush.bf16.msra.mxu2 %v960_v10  ;;  %v858_v59 = vld [vmem:[%s1312_s0 + $0xb8] sm:$0xf0]  ;;  %v857_v61 = vor.u32 %v997_v55, %v856_v54  ;;  %v797_v62 = vor.u32 %v980_v56, %v794_v57  ;;  %v800_v0 = vld [vmem:[%s1312_s0 + $0x40] sm:$0xf]  ;;  %v983_v1 = vld [vmem:[%s1312_s0 + $0x44] sm:$0xf0] }
  0x17   :  { %499 = vmatpush.bf16.msra.mxu1 %v968_v11  ;;  %1019 = vmatpush.bf16.msra.mxu3 %v968_v11  ;;  %v861_v63 = vor.u32 %v996_v58, %v858_v59  ;;  %v864_v2 = vld [vmem:[%s1312_s0 + $0xc0] sm:$0xf]  ;;  %v999_v3 = vld [vmem:[%s1312_s0 + $0xc4] sm:$0xf0]  ;;  %v982_v4 = vld [vmem:[%s1312_s0 + $0x44] sm:$0xf]  ;;  %v801_v8 = vor.u32 %v983_v1, %v800_v0 }
  0x18   :  { %v802_v5 = vld [vmem:[%s1312_s0 + $0x48] sm:$0xf0]  ;;  %v998_v6 = vld [vmem:[%s1312_s0 + $0xc4] sm:$0xf]  ;;  %v865_v9 = vor.u32 %v999_v3, %v864_v2  ;;  %v984_v16 = vld [vmem:[%s1312_s0 + $0x54] sm:$0xf] }
  0x19   :  { %v866_v7 = vld [vmem:[%s1312_s0 + $0xc8] sm:$0xf0]  ;;  %v805_v10 = vor.u32 %v982_v4, %v802_v5  ;;  %v810_v17 = vld [vmem:[%s1312_s0 + $0x58] sm:$0xf0]  ;;  %v1000_v18 = vld [vmem:[%s1312_s0 + $0xd4] sm:$0xf] }
  0x1a   :  { %411 = vmatpush.bf16.msra.mxu0 %v959_v12  ;;  %1012 = vmatpush.bf16.msra.mxu2 %v959_v12  ;;  %v869_v11 = vor.u32 %v998_v6, %v866_v7  ;;  %v808_v12 = vld [vmem:[%s1312_s0 + $0x50] sm:$0xf]  ;;  %v874_v19 = vld [vmem:[%s1312_s0 + $0xd8] sm:$0xf0]  ;;  %v813_v22 = vor.u32 %v984_v16, %v810_v17  ;;  %v986_v28 = vld [vmem:[%s1312_s0 + $0x64] sm:$0xf] }
  0x1b   :  { %500 = vmatpush.bf16.msra.mxu1 %v967_v13  ;;  %1020 = vmatpush.bf16.msra.mxu3 %v967_v13  ;;  %v985_v13 = vld [vmem:[%s1312_s0 + $0x54] sm:$0xf0]  ;;  %v877_v23 = vor.u32 %v1000_v18, %v874_v19  ;;  %v818_v29 = vld [vmem:[%s1312_s0 + $0x68] sm:$0xf0]  ;;  %v1002_v30 = vld [vmem:[%s1312_s0 + $0xe4] sm:$0xf] }
  0x1c   :  { %v809_v20 = vor.u32 %v985_v13, %v808_v12  ;;  %v882_v31 = vld [vmem:[%s1312_s0 + $0xe8] sm:$0xf0]  ;;  %v821_v34 = vor.u32 %v986_v28, %v818_v29  ;;  %v988_v40 = vld [vmem:[%s1312_s0 + $0x74] sm:$0xf]  ;;  %v826_v41 = vld [vmem:[%s1312_s0 + $0x78] sm:$0xf0] }
  0x1d   :  { %v885_v35 = vor.u32 %v1002_v30, %v882_v31  ;;  %v1004_v42 = vld [vmem:[%s1312_s0 + $0xf4] sm:$0xf]  ;;  %v890_v43 = vld [vmem:[%s1312_s0 + $0xf8] sm:$0xf0]  ;;  %v829_v46 = vor.u32 %v988_v40, %v826_v41 }
  0x1e   :  { %412 = vmatpush.bf16.msra.mxu0 %v958_v14  ;;  %1013 = vmatpush.bf16.msra.mxu2 %v958_v14  ;;  %v872_v14 = vld [vmem:[%s1312_s0 + $0xd0] sm:$0xf]  ;;  %v893_v47 = vor.u32 %v1004_v42, %v890_v43 }
  0x1f   :  { %501 = vmatpush.bf16.msra.mxu1 %v966_v15  ;;  %1021 = vmatpush.bf16.msra.mxu3 %v966_v15  ;;  %v1001_v15 = vld [vmem:[%s1312_s0 + $0xd4] sm:$0xf0] }
  0x20   :  { %v873_v21 = vor.u32 %v1001_v15, %v872_v14 }
  0x21   :  { %413 = vmatmul.bf16.vlgmr.msra.gmra.mxu0 %v769_v24  ;;  %453 = vmatmul.bf16.vlgmr.msra.gmra.mxu2 %v833_v25  ;;  %v816_v24 = vld [vmem:[%s1312_s0 + $0x60] sm:$0xf]  ;;  %v987_v25 = vld [vmem:[%s1312_s0 + $0x64] sm:$0xf0] }
  0x22   :  { %502 = vmatmul.bf16.vlgmr.msra.gmra.mxu1 %v773_v26  ;;  %542 = vmatmul.bf16.vlgmr.msra.gmra.mxu3 %v837_v27  ;;  %v880_v26 = vld [vmem:[%s1312_s0 + $0xe0] sm:$0xf]  ;;  %v1003_v27 = vld [vmem:[%s1312_s0 + $0xe4] sm:$0xf0]  ;;  %v817_v32 = vor.u32 %v987_v25, %v816_v24 }
  0x23   :  { %v881_v33 = vor.u32 %v1003_v27, %v880_v26 }
  0x31   :  { %418 = vmatmul.bf16.gmra.mxu0 %v777_v36  ;;  %458 = vmatmul.bf16.gmra.mxu2 %v841_v37  ;;  %v824_v36 = vld [vmem:[%s1312_s0 + $0x70] sm:$0xf]  ;;  %v989_v37 = vld [vmem:[%s1312_s0 + $0x74] sm:$0xf0] }
  0x32   :  { %507 = vmatmul.bf16.gmra.mxu1 %v781_v38  ;;  %547 = vmatmul.bf16.gmra.mxu3 %v845_v39  ;;  %v888_v38 = vld [vmem:[%s1312_s0 + $0xf0] sm:$0xf]  ;;  %v1005_v39 = vld [vmem:[%s1312_s0 + $0xf4] sm:$0xf0]  ;;  %v825_v44 = vor.u32 %v989_v37, %v824_v36  ;;  %s1051_s0 = smov [#allocation3]  }
  0x33   :  { %v889_v45 = vor.u32 %v1005_v39, %v888_v38  ;;  %s750_s24 = sshll.u32 %s1051_s0, 4  ;;  %s751_s24 = int_to_ptr.vmem [resolvable:$true] %s750_s24 }
  0x41   :  { %423 = vmatmul.bf16.gmra.mxu0 %v785_v48  ;;  %463 = vmatmul.bf16.gmra.mxu2 %v849_v49 }
  0x42   :  { %512 = vmatmul.bf16.gmra.mxu1 %v789_v50  ;;  %552 = vmatmul.bf16.gmra.mxu3 %v853_v51 }
  0x51   :  { %428 = vmatmul.bf16.gmra.mxu0 %v793_v60  ;;  %468 = vmatmul.bf16.gmra.mxu2 %v857_v61 }
  0x52   :  { %517 = vmatmul.bf16.gmra.mxu1 %v797_v62  ;;  %557 = vmatmul.bf16.gmra.mxu3 %v861_v63 }
  0x61   :  { %433 = vmatmul.bf16.gmra.mxu0 %v801_v8  ;;  %473 = vmatmul.bf16.gmra.mxu2 %v865_v9 }
  0x62   :  { %522 = vmatmul.bf16.gmra.mxu1 %v805_v10  ;;  %562 = vmatmul.bf16.gmra.mxu3 %v869_v11 }
  0x71   :  { %438 = vmatmul.bf16.gmra.mxu0 %v809_v20  ;;  %478 = vmatmul.bf16.gmra.mxu2 %v873_v21 }
  0x72   :  { %527 = vmatmul.bf16.gmra.mxu1 %v813_v22  ;;  %567 = vmatmul.bf16.gmra.mxu3 %v877_v23 }
  0x81   :  { %443 = vmatmul.bf16.gmra.mxu0 %v817_v32  ;;  %483 = vmatmul.bf16.gmra.mxu2 %v881_v33 }
  0x82   :  { %532 = vmatmul.bf16.gmra.mxu1 %v821_v34  ;;  %572 = vmatmul.bf16.gmra.mxu3 %v885_v35 }
  0x91   :  { %448 = vmatmul.bf16.gmra.mxu0 %v825_v44  ;;  %488 = vmatmul.bf16.gmra.mxu2 %v889_v45 }
  0x92   :  { %537 = vmatmul.bf16.gmra.mxu1 %v829_v46  ;;  %577 = vmatmul.bf16.gmra.mxu3 %v893_v47 }
  0x9e   :  { %v414_v48 = vpop.f32.mrf.mxu0 }
  0x9f   :  { %v503_v49 = vpop.f32.mrf.mxu1 }
  0xa0   :  { %v504_v50 = vadd.f32 %v503_v49, %v414_v48 }
  0xa2   :  { %v682_v51 = vmax.f32 %v504_v50, 0.0 }
  0xa4   :  { %714 = vst [vmem:[#allocation3] sm:$0xff] %v682_v51  ;;  %v454_v52 = vpop.f32.mrf.mxu2 }
  0xa5   :  { %v543_v53 = vpop.f32.mrf.mxu3 }
  0xa6   :  { %v544_v54 = vadd.f32 %v543_v53, %v454_v52  ;;  %v416_v55 = vpop.f32.mrf.mxu0 }
  0xa7   :  { %v505_v56 = vpop.f32.mrf.mxu1 }
  0xa8   :  { %v698_v57 = vmax.f32 %v544_v54, 0.0  ;;  %v506_v58 = vadd.f32 %v505_v56, %v416_v55 }
  0xaa   :  { %730 = vst [vmem:[#allocation3 + $0x80] sm:$0xff] %v698_v57  ;;  %v683_v59 = vmax.f32 %v506_v58, 0.0 }
  0xac   :  { %715 = vst [vmem:[#allocation3 + $0x8] sm:$0xff] %v683_v59  ;;  %v456_v60 = vpop.f32.mrf.mxu2 }
  0xad   :  { %v545_v61 = vpop.f32.mrf.mxu3 }
  0xae   :  { %v546_v62 = vadd.f32 %v545_v61, %v456_v60  ;;  %v419_v63 = vpop.f32.mrf.mxu0 }
  0xaf   :  { %v508_v0 = vpop.f32.mrf.mxu1 }
  0xb0   :  { %v699_v1 = vmax.f32 %v546_v62, 0.0  ;;  %v509_v2 = vadd.f32 %v508_v0, %v419_v63 }
  0xb2   :  { %731 = vst [vmem:[#allocation3 + $0x88] sm:$0xff] %v699_v1  ;;  %v684_v3 = vmax.f32 %v509_v2, 0.0 }
  0xb4   :  { %716 = vst [vmem:[#allocation3 + $0x10] sm:$0xff] %v684_v3  ;;  %v459_v4 = vpop.f32.mrf.mxu2 }
  0xb5   :  { %v548_v5 = vpop.f32.mrf.mxu3 }
  0xb6   :  { %v549_v6 = vadd.f32 %v548_v5, %v459_v4  ;;  %v421_v7 = vpop.f32.mrf.mxu0 }
  0xb7   :  { %v510_v8 = vpop.f32.mrf.mxu1 }
  0xb8   :  { %v700_v9 = vmax.f32 %v549_v6, 0.0  ;;  %v511_v10 = vadd.f32 %v510_v8, %v421_v7 }
  0xba   :  { %732 = vst [vmem:[#allocation3 + $0x90] sm:$0xff] %v700_v9  ;;  %v685_v11 = vmax.f32 %v511_v10, 0.0 }
  0xbc   :  { %717 = vst [vmem:[#allocation3 + $0x18] sm:$0xff] %v685_v11  ;;  %v461_v12 = vpop.f32.mrf.mxu2 }
  0xbd   :  { %v550_v13 = vpop.f32.mrf.mxu3 }
  0xbe   :  { %v551_v14 = vadd.f32 %v550_v13, %v461_v12  ;;  %v424_v15 = vpop.f32.mrf.mxu0 }
  0xbf   :  { %v513_v16 = vpop.f32.mrf.mxu1 }
  0xc0   :  { %v701_v17 = vmax.f32 %v551_v14, 0.0  ;;  %v514_v18 = vadd.f32 %v513_v16, %v424_v15 }
  0xc2   :  { %733 = vst [vmem:[#allocation3 + $0x98] sm:$0xff] %v701_v17  ;;  %v686_v19 = vmax.f32 %v514_v18, 0.0 }
  0xc4   :  { %718 = vst [vmem:[#allocation3 + $0x20] sm:$0xff] %v686_v19  ;;  %v464_v20 = vpop.f32.mrf.mxu2 }
  0xc5   :  { %v553_v21 = vpop.f32.mrf.mxu3 }
  0xc6   :  { %v554_v22 = vadd.f32 %v553_v21, %v464_v20  ;;  %v426_v23 = vpop.f32.mrf.mxu0 }
  0xc7   :  { %v515_v24 = vpop.f32.mrf.mxu1 }
  0xc8   :  { %v702_v25 = vmax.f32 %v554_v22, 0.0  ;;  %v516_v26 = vadd.f32 %v515_v24, %v426_v23 }
  0xca   :  { %734 = vst [vmem:[#allocation3 + $0xa0] sm:$0xff] %v702_v25  ;;  %v687_v27 = vmax.f32 %v516_v26, 0.0 }
  0xcc   :  { %719 = vst [vmem:[#allocation3 + $0x28] sm:$0xff] %v687_v27  ;;  %v466_v28 = vpop.f32.mrf.mxu2 }
  0xcd   :  { %v555_v29 = vpop.f32.mrf.mxu3 }
  0xce   :  { %v556_v30 = vadd.f32 %v555_v29, %v466_v28  ;;  %v429_v31 = vpop.f32.mrf.mxu0 }
  0xcf   :  { %v518_v32 = vpop.f32.mrf.mxu1 }
  0xd0   :  { %v703_v33 = vmax.f32 %v556_v30, 0.0  ;;  %v519_v34 = vadd.f32 %v518_v32, %v429_v31 }
  0xd2   :  { %735 = vst [vmem:[#allocation3 + $0xa8] sm:$0xff] %v703_v33  ;;  %v688_v35 = vmax.f32 %v519_v34, 0.0 }
  0xd4   :  { %720 = vst [vmem:[#allocation3 + $0x30] sm:$0xff] %v688_v35  ;;  %v469_v36 = vpop.f32.mrf.mxu2 }
  0xd5   :  { %v558_v37 = vpop.f32.mrf.mxu3 }
  0xd6   :  { %v559_v38 = vadd.f32 %v558_v37, %v469_v36  ;;  %v431_v39 = vpop.f32.mrf.mxu0 }
  0xd7   :  { %v520_v40 = vpop.f32.mrf.mxu1 }
  0xd8   :  { %v704_v41 = vmax.f32 %v559_v38, 0.0  ;;  %v521_v42 = vadd.f32 %v520_v40, %v431_v39 }
  0xda   :  { %736 = vst [vmem:[#allocation3 + $0xb0] sm:$0xff] %v704_v41  ;;  %v689_v43 = vmax.f32 %v521_v42, 0.0 }
  0xdc   :  { %721 = vst [vmem:[#allocation3 + $0x38] sm:$0xff] %v689_v43  ;;  %v471_v44 = vpop.f32.mrf.mxu2 }
  0xdd   :  { %v560_v45 = vpop.f32.mrf.mxu3 }
  0xde   :  { %v561_v46 = vadd.f32 %v560_v45, %v471_v44  ;;  %v434_v47 = vpop.f32.mrf.mxu0 }
  0xdf   :  { %v523_v48 = vpop.f32.mrf.mxu1 }
  0xe0   :  { %v705_v49 = vmax.f32 %v561_v46, 0.0  ;;  %v524_v50 = vadd.f32 %v523_v48, %v434_v47 }
  0xe2   :  { %737 = vst [vmem:[#allocation3 + $0xb8] sm:$0xff] %v705_v49  ;;  %v690_v51 = vmax.f32 %v524_v50, 0.0 }
  0xe4   :  { %722 = vst [vmem:[#allocation3 + $0x40] sm:$0xff] %v690_v51  ;;  %v474_v52 = vpop.f32.mrf.mxu2 }
  0xe5   :  { %v563_v53 = vpop.f32.mrf.mxu3 }
  0xe6   :  { %v564_v54 = vadd.f32 %v563_v53, %v474_v52  ;;  %v436_v55 = vpop.f32.mrf.mxu0 }
  0xe7   :  { %v525_v56 = vpop.f32.mrf.mxu1 }
  0xe8   :  { %v706_v57 = vmax.f32 %v564_v54, 0.0  ;;  %v526_v58 = vadd.f32 %v525_v56, %v436_v55 }
  0xea   :  { %738 = vst [vmem:[#allocation3 + $0xc0] sm:$0xff] %v706_v57  ;;  %v691_v59 = vmax.f32 %v526_v58, 0.0 }
  0xec   :  { %723 = vst [vmem:[#allocation3 + $0x48] sm:$0xff] %v691_v59  ;;  %v476_v60 = vpop.f32.mrf.mxu2 }
  0xed   :  { %v565_v61 = vpop.f32.mrf.mxu3 }
  0xee   :  { %v566_v62 = vadd.f32 %v565_v61, %v476_v60  ;;  %v439_v63 = vpop.f32.mrf.mxu0 }
  0xef   :  { %v528_v0 = vpop.f32.mrf.mxu1 }
  0xf0   :  { %v707_v1 = vmax.f32 %v566_v62, 0.0  ;;  %v529_v2 = vadd.f32 %v528_v0, %v439_v63 }
  0xf2   :  { %739 = vst [vmem:[#allocation3 + $0xc8] sm:$0xff] %v707_v1  ;;  %v692_v3 = vmax.f32 %v529_v2, 0.0 }
  0xf4   :  { %724 = vst [vmem:[#allocation3 + $0x50] sm:$0xff] %v692_v3  ;;  %v479_v4 = vpop.f32.mrf.mxu2 }
  0xf5   :  { %v568_v5 = vpop.f32.mrf.mxu3 }
  0xf6   :  { %v569_v6 = vadd.f32 %v568_v5, %v479_v4  ;;  %v441_v7 = vpop.f32.mrf.mxu0 }
  0xf7   :  { %v530_v8 = vpop.f32.mrf.mxu1 }
  0xf8   :  { %v708_v9 = vmax.f32 %v569_v6, 0.0  ;;  %v531_v10 = vadd.f32 %v530_v8, %v441_v7 }
  0xfa   :  { %740 = vst [vmem:[#allocation3 + $0xd0] sm:$0xff] %v708_v9  ;;  %v693_v11 = vmax.f32 %v531_v10, 0.0 }
  0xfc   :  { %725 = vst [vmem:[#allocation3 + $0x58] sm:$0xff] %v693_v11  ;;  %v481_v12 = vpop.f32.mrf.mxu2 }
  0xfd   :  { %v570_v13 = vpop.f32.mrf.mxu3 }
  0xfe   :  { %v571_v14 = vadd.f32 %v570_v13, %v481_v12  ;;  %v444_v15 = vpop.f32.mrf.mxu0 }
  0xff   :  { %v533_v16 = vpop.f32.mrf.mxu1 }
 0x100   :  { %v709_v17 = vmax.f32 %v571_v14, 0.0  ;;  %v534_v18 = vadd.f32 %v533_v16, %v444_v15 }
 0x102   :  { %741 = vst [vmem:[#allocation3 + $0xd8] sm:$0xff] %v709_v17  ;;  %v694_v19 = vmax.f32 %v534_v18, 0.0 }
 0x104   :  { %726 = vst [vmem:[#allocation3 + $0x60] sm:$0xff] %v694_v19  ;;  %v484_v20 = vpop.f32.mrf.mxu2 }
 0x105   :  { %v573_v21 = vpop.f32.mrf.mxu3 }
 0x106   :  { %v574_v22 = vadd.f32 %v573_v21, %v484_v20  ;;  %v446_v23 = vpop.f32.mrf.mxu0 }
 0x107   :  { %v535_v24 = vpop.f32.mrf.mxu1 }
 0x108   :  { %v710_v25 = vmax.f32 %v574_v22, 0.0  ;;  %v536_v26 = vadd.f32 %v535_v24, %v446_v23 }
 0x10a   :  { %742 = vst [vmem:[#allocation3 + $0xe0] sm:$0xff] %v710_v25  ;;  %v695_v27 = vmax.f32 %v536_v26, 0.0 }
 0x10c   :  { %727 = vst [vmem:[#allocation3 + $0x68] sm:$0xff] %v695_v27  ;;  %v486_v28 = vpop.f32.mrf.mxu2 }
 0x10d   :  { %v575_v29 = vpop.f32.mrf.mxu3 }
 0x10e   :  { %v576_v30 = vadd.f32 %v575_v29, %v486_v28  ;;  %v449_v31 = vpop.f32.mrf.mxu0 }
 0x10f   :  { %v538_v32 = vpop.f32.mrf.mxu1 }
 0x110   :  { %v711_v33 = vmax.f32 %v576_v30, 0.0  ;;  %v539_v34 = vadd.f32 %v538_v32, %v449_v31 }
 0x112   :  { %743 = vst [vmem:[#allocation3 + $0xe8] sm:$0xff] %v711_v33  ;;  %v696_v35 = vmax.f32 %v539_v34, 0.0 }
 0x114   :  { %728 = vst [vmem:[#allocation3 + $0x70] sm:$0xff] %v696_v35  ;;  %v489_v36 = vpop.f32.mrf.mxu2 }
 0x115   :  { %v578_v37 = vpop.f32.mrf.mxu3 }
 0x116   :  { %v579_v38 = vadd.f32 %v578_v37, %v489_v36  ;;  %v451_v39 = vpop.f32.mrf.mxu0 }
 0x117   :  { %v540_v40 = vpop.f32.mrf.mxu1 }
 0x118   :  { %v712_v41 = vmax.f32 %v579_v38, 0.0  ;;  %v541_v42 = vadd.f32 %v540_v40, %v451_v39 }
 0x11a   :  { %744 = vst [vmem:[#allocation3 + $0xf0] sm:$0xff] %v712_v41  ;;  %v697_v43 = vmax.f32 %v541_v42, 0.0 }
 0x11c   :  { %729 = vst [vmem:[#allocation3 + $0x78] sm:$0xff] %v697_v43  ;;  %v491_v44 = vpop.f32.mrf.mxu2 }
 0x11d   :  { %v580_v45 = vpop.f32.mrf.mxu3 }
 0x11e   :  { %v581_v46 = vadd.f32 %v580_v45, %v491_v44 }
 0x120   :  { %v713_v47 = vmax.f32 %v581_v46, 0.0 }
 0x122   :  { %745 = vst [vmem:[#allocation3 + $0xf8] sm:$0xff] %v713_v47 }
 0x123   :  { %758 = dma.vmem_to_hbm [thread:$0]  %s751_s24, 4096, %s753_s27, [#allocation4], %s1052_s28, %s1052_s28, %s1053_s29  }
 0x124   :  { %1049 = dma.done.wait [#allocation4], 4096  }
 0x125   :  { %1050 = vsyncadd [#allocation4], 4294963200 }
 0x126   :  { %763 = vsyncpa [#allocation4], 1 }

</bundles_post_ra>
